<compile_context>
chip_gen: v5e
topology: v5e:2x2
jax: 0.10.0
libtpu: 0.0.40
codegen_flags: <defaults>
</compile_context>

<pallas_src>
import functools
import math

import jax
import jax.numpy as jnp
from jax import lax
from jax.experimental import pallas as pl
from jax.experimental.pallas import tpu as pltpu

_EPS = 1e-12


# ---------------------------------------------------------------------------
# in-kernel helpers
# ---------------------------------------------------------------------------

def _nt_dot(lhs, rhs):
    """lhs [m, k] x rhs [n, k]^T -> [m, n], f32 MXU accumulation."""
    return lax.dot_general(lhs, rhs, (((1,), (1,)), ((), ())),
                           preferred_element_type=jnp.float32)


def _rows_lane_sumsq(x_bf):
    """[rows, C'] bf16 -> [1, rows] f32 row sums of squares.

    Uses an MXU ones-matvec so the per-row scalars land directly in the
    lane-dense orientation (rows on the 128-lane axis), avoiding a
    sublane->lane relayout and any divides.
    """
    ones = jnp.ones((8, x_bf.shape[-1]), dtype=jnp.bfloat16)
    return _nt_dot(ones, x_bf * x_bf)[0:1, :]


def _class_sums(f_n, way):
    """f_n [rows, C'] f32 -> (G [way, C'] f32, f_n bf16 copy).

    G[v, :] = sum_{r: r % way == v} f_n[r, :].  Computed with a bf16 hi/lo
    split mask matmul (f32 accumulation) so the class sum is f32-accurate
    while still using the otherwise idle MXU.  Rows must be class aligned
    (block offset % way == 0), which the wrapper guarantees.
    """
    rows = f_n.shape[0]
    fn_hi = f_n.astype(jnp.bfloat16)
    fn_lo = (f_n - fn_hi.astype(jnp.float32)).astype(jnp.bfloat16)
    v_idx = lax.broadcasted_iota(jnp.int32, (way, rows), 0)
    r_idx = lax.broadcasted_iota(jnp.int32, (way, rows), 1)
    cls = ((r_idx % way) == v_idx).astype(jnp.float32).astype(jnp.bfloat16)
    g = (jnp.dot(cls, fn_hi, preferred_element_type=jnp.float32)
         + jnp.dot(cls, fn_lo, preferred_element_type=jnp.float32))
    return g, fn_hi


def _loss_terms_t(s_t, diag_t, *, b, way, temperature):
    """Per-prototype loss terms in the lane-dense [way, rows] layout.

    s_t[v, r]    = sum_j <f_norm_r, f_norm_{j*way+v}>   (raw, unscaled)
    diag_t[0, r] = <f_norm_r, f_norm_r>
    returns term[0, r] = -log(pos_r / (pos_r + neg_sum_r))        [1, rows]
    """
    way_, rows = s_t.shape
    v_idx = lax.broadcasted_iota(jnp.int32, (way_, rows), 0)
    r_idx = lax.broadcasted_iota(jnp.int32, (way_, rows), 1)
    same = (r_idx % way) == v_idx          # rows are class aligned -> static

    inv_t_bm1 = 1.0 / (temperature * (b - 1))   # folds 1/T and 1/(b-1)
    inv_t_b = 1.0 / (temperature * b)           # folds 1/T and 1/b

    # pos = exp( (sum_{j != i} sim[i,j,w,w]) / (T*(b-1)) )
    s_sel = jnp.sum(jnp.where(same, s_t, 0.0), axis=0, keepdims=True)  # [1, rows]
    arg_pos = (s_sel - diag_t) * inv_t_bm1
    pos = jnp.exp(arg_pos)

    # neg_sum = sum_{v != w} exp( sum_j sim[i,j,w,v] / (T*b) )
    negs = jnp.where(same, 0.0, jnp.exp(s_t * inv_t_b))                # [way, rows]
    neg_sum = jnp.sum(negs, axis=0, keepdims=True)                     # [1, rows]

    # -log(pos / (pos + neg_sum)) == log(pos + neg_sum) - arg_pos
    return jnp.log(pos + neg_sum) - arg_pos


# ---------------------------------------------------------------------------
# kernels
# ---------------------------------------------------------------------------

def _fused_kernel(*refs, b, way, temperature, has_proj):
    """Single-pass fast path: project/normalize, build G, compute the loss."""
    if has_proj:
        f_ref, w_ref, o_ref = refs
    else:
        f_ref, o_ref = refs
        w_ref = None

    f = f_ref[...].astype(jnp.float32)
    if w_ref is not None:                 # fused PrototypeMapping projection
        f = jnp.dot(f, w_ref[...].astype(jnp.float32),
                    preferred_element_type=jnp.float32)

    sumsq = jnp.sum(f * f, axis=-1, keepdims=True)                 # [rows, 1]
    f_n = f * lax.rsqrt(sumsq + _EPS)                              # [rows, C'] f32

    g, fn_hi = _class_sums(f_n, way)                               # f32 G, bf16 f_n
    s_t = _nt_dot(g.astype(jnp.bfloat16), fn_hi)                   # [way, rows]
    diag_t = _rows_lane_sumsq(fn_hi)                               # [1, rows]

    term = _loss_terms_t(s_t, diag_t, b=b, way=way, temperature=temperature)
    o_ref[...] = jnp.sum(term, axis=1, keepdims=True) * (0.1 / (b * way))


def _norm_classsum_kernel(*refs, way, has_proj):
    """Two-pass path, pass 1: normalize (+project), emit bf16 f_norm and
    per-block f32 class sums (G partials)."""
    if has_proj:
        f_ref, w_ref, fn_ref, gpart_ref = refs
    else:
        f_ref, fn_ref, gpart_ref = refs
        w_ref = None

    f = f_ref[...].astype(jnp.float32)
    if w_ref is not None:
        f = jnp.dot(f, w_ref[...].astype(jnp.float32),
                    preferred_element_type=jnp.float32)

    sumsq = jnp.sum(f * f, axis=-1, keepdims=True)
    f_n = f * lax.rsqrt(sumsq + _EPS)

    g, fn_hi = _class_sums(f_n, way)
    fn_ref[...] = fn_hi                            # bf16 copy consumed by pass 2
    gpart_ref[...] = g.reshape(gpart_ref.shape)    # [1, way, c_out]


def _loss_block_kernel(fn_ref, g_ref, o_ref, *, b, way, temperature):
    """Two-pass path, pass 2: lane-dense loss terms from bf16 f_norm + G."""
    fn = fn_ref[...]                               # [rows, C'] bf16
    g = g_ref[...]                                 # [way, C'] bf16
    s_t = _nt_dot(g, fn)                           # [way, rows]
    diag_t = _rows_lane_sumsq(fn)                  # [1, rows] = <fn_r, fn_r>
    term = _loss_terms_t(s_t, diag_t, b=b, way=way, temperature=temperature)
    o_ref[...] = jnp.broadcast_to(jnp.sum(term, axis=1, keepdims=True),
                                  o_ref.shape)     # per-block partial, lane-dense


# ---------------------------------------------------------------------------
# wrapper
# ---------------------------------------------------------------------------

def _vmem_budget_bytes():
    try:
        cap = int(pltpu.get_tpu_info().vmem_capacity_bytes)
    except Exception:
        cap = 64 << 20            # conservative (v7x-sized) fallback
    return int(min((cap * 3) // 4, 96 << 20))


def _pick_block_rows(bw, way, row_bytes, max_tile_bytes):
    """Largest multiple of lcm(8, way) dividing bw with a tile <= budget."""
    unit = (8 * way) // math.gcd(8, way)
    if bw % unit != 0 or bw <= unit:
        return bw
    cap_rows = max(unit, (max_tile_bytes // max(row_bytes, 1)) // unit * unit)
    cand = min(bw, cap_rows)
    best, r = unit, unit
    while r <= cand:
        if bw % r == 0:
            best = r
        r += unit
    return best


def cls2cls_cl_loss(features, *, temperature=0.2, proj_w=None, block_rows=None):
    """features: [B, WAY, C] prototypes.  Returns the scalar clsLoss_mm."""
    b, way, c = features.shape
    assert b >= 2, "clsLoss_mm divides by (b - 1)"
    bw = b * way
    has_proj = proj_w is not None
    c_out = int(proj_w.shape[1]) if has_proj else c
    temperature = float(temperature)
    scale = 0.1 / (b * way)

    f_flat = features.reshape(bw, c)

    vmem_budget = _vmem_budget_bytes()
    max_tile_bytes = min(16 << 20, max(1 << 20, (vmem_budget - (4 << 20)) // 5))
    w_bytes = 4 * c * c_out if has_proj else 0

    # ---- single-pass fused fast path ---------------------------------------
    fused_need = (4 * bw * (c + 3 * c_out) + 4 * way * (c_out + bw)
                  + w_bytes + (2 << 20))
    if block_rows is None:
        use_fused = fused_need <= vmem_budget // 2
    else:
        use_fused = block_rows >= bw

    if use_fused:
        in_specs = [pl.BlockSpec((bw, c), lambda i: (0, 0))]
        args = (f_flat,)
        if has_proj:
            in_specs.append(pl.BlockSpec((c, c_out), lambda i: (0, 0)))
            args = (f_flat, proj_w)
        out = pl.pallas_call(
            functools.partial(_fused_kernel, b=b, way=way,
                              temperature=temperature, has_proj=has_proj),
            out_shape=jax.ShapeDtypeStruct((1, 1), jnp.float32),
            grid=(1,),
            in_specs=in_specs,
            out_specs=pl.BlockSpec((1, 1), lambda i: (0, 0)),
            compiler_params=pltpu.CompilerParams(
                dimension_semantics=("arbitrary",),
                vmem_limit_bytes=vmem_budget),
        )(*args)
        return out[0, 0]

    # ---- two-pass pipelined path (large B*WAY) ------------------------------
    if block_rows is None:
        block_rows = _pick_block_rows(bw, way, 4 * c + 8 * c_out, max_tile_bytes)
    assert bw % block_rows == 0, "block_rows must divide B*WAY"
    assert block_rows % way == 0, "blocks must be class aligned"
    assert block_rows % 8 == 0 or block_rows == bw
    n_blk = bw // block_rows

    cparams = pltpu.CompilerParams(dimension_semantics=("parallel",),
                                   vmem_limit_bytes=vmem_budget)

    f_spec = pl.BlockSpec((block_rows, c), lambda i: (i, 0))
    fn_spec = pl.BlockSpec((block_rows, c_out), lambda i: (i, 0))
    w_spec = pl.BlockSpec((c, c_out), lambda i: (0, 0))

    # pass 1: normalize (+project), emit bf16 f_norm and per-block G partials
    in_specs1 = [f_spec] + ([w_spec] if has_proj else [])
    args1 = (f_flat, proj_w) if has_proj else (f_flat,)
    fn_bf, g_part = pl.pallas_call(
        functools.partial(_norm_classsum_kernel, way=way, has_proj=has_proj),
        out_shape=(jax.ShapeDtypeStruct((bw, c_out), jnp.bfloat16),
                   jax.ShapeDtypeStruct((n_blk, way, c_out), jnp.float32)),
        grid=(n_blk,),
        in_specs=in_specs1,
        out_specs=(fn_spec, pl.BlockSpec((1, way, c_out), lambda i: (i, 0, 0))),
        compiler_params=cparams,
    )(*args1)

    # tiny cross-block reduction + one-time bf16 cast of the grid-invariant G
    g_bf = jnp.sum(g_part, axis=0).astype(jnp.bfloat16)

    # pass 2: lane-dense loss terms, per-block partial sums
    parts = pl.pallas_call(
        functools.partial(_loss_block_kernel, b=b, way=way,
                          temperature=temperature),
        out_shape=jax.ShapeDtypeStruct((n_blk, 8, 128), jnp.float32),
        grid=(n_blk,),
        in_specs=[fn_spec, pl.BlockSpec((way, c_out), lambda i: (0, 0))],
        out_specs=pl.BlockSpec((1, 8, 128), lambda i: (i, 0, 0)),
        compiler_params=cparams,
    )(fn_bf, g_bf)

    return jnp.sum(parts[:, 0, 0]) * scale


# ---------------------------------------------------------------------------
# pure-JAX reference (PrototypeMapping + clsLoss_mm transcription)
# ---------------------------------------------------------------------------

def _reference(features, temperature, proj_w=None):
    if proj_w is not None:
        features = jnp.einsum("bwc,cd->bwd", features, proj_w)
    b, way, _ = features.shape
    f = features * lax.rsqrt(jnp.sum(features * features, axis=-1,
                                     keepdims=True) + _EPS)
    sim = jnp.einsum("iwc,jvc->ijwv", f, f) / temperature
    pos_sim = jnp.sum(sim, axis=1)
    self_sim = jnp.einsum("iiwv->iwv", sim)
    pos_sim = pos_sim - self_sim
    pos_diag = jnp.exp(jnp.einsum("iww->iw", pos_sim) / (b - 1))
    neg = jnp.exp(jnp.sum(sim, axis=1) / b)
    sum_neg = jnp.sum(neg, axis=2) - jnp.einsum("iww->iw", neg)
    term = -jnp.log(pos_diag / (pos_diag + sum_neg))
    return jnp.sum(term) / b / way * 0.1


if __name__ == "__main__":
    key = jax.random.PRNGKey(0)
    k1, k2, k3 = jax.random.split(key, 3)

    # bf16 MXU operands -> loosened tolerance vs the f32 reference.
    RTOL, ATOL = 3e-2, 1e-3

    # 1) fused single-pass path (typical few-shot episode): b=4, way=4, C=128
    b, way, in_c = 4, 4, 128
    feats = jax.random.normal(k1, (b, way, in_c), dtype=jnp.float32)
    loss = jax.block_until_ready(cls2cls_cl_loss(feats, temperature=0.2))
    ref = _reference(feats, 0.2)
    assert jnp.allclose(loss, ref, rtol=RTOL, atol=ATOL), (loss, ref)

    # 2) two-pass pipelined path (forced small blocks): bw=64, grid=4
    feats2 = jax.random.normal(k2, (16, 4, in_c), dtype=jnp.float32)
    loss2 = jax.block_until_ready(
        cls2cls_cl_loss(feats2, temperature=0.2, block_rows=16))
    ref2 = _reference(feats2, 0.2)
    assert jnp.allclose(loss2, ref2, rtol=RTOL, atol=ATOL), (loss2, ref2)

    # 3) fused projection path (if_proj=True), single pass
    proj_w = jax.random.normal(k3, (in_c, 64), dtype=jnp.float32) / jnp.sqrt(in_c)
    loss3 = jax.block_until_ready(
        cls2cls_cl_loss(feats, temperature=0.2, proj_w=proj_w))
    ref3 = _reference(feats, 0.2, proj_w=proj_w)
    assert jnp.allclose(loss3, ref3, rtol=RTOL, atol=ATOL), (loss3, ref3)

    # 4) two-pass + fused projection
    loss4 = jax.block_until_ready(
        cls2cls_cl_loss(feats2, temperature=0.2, proj_w=proj_w, block_rows=16))
    ref4 = _reference(feats2, 0.2, proj_w=proj_w)
    assert jnp.allclose(loss4, ref4, rtol=RTOL, atol=ATOL), (loss4, ref4)

    print("KERNEL_OK")
</pallas_src>

<mosaic_0001>
module attributes {stable_mosaic.version = 11 : i64} {
  func.func @_fused_kernel(%arg0: i32, %arg1: memref<16x128xf32, #tpu.memory_space<vmem>>, %arg2: memref<1x1xf32, #tpu.memory_space<vmem>>) attributes {dimension_semantics = [#tpu.dimension_semantics<arbitrary>], iteration_bounds = array<i64: 1>, scalar_prefetch = 0 : i64, scratch_operands = 0 : i64, tpu.core_type = #tpu.core_type<tc>, window_params = [{pipeline_mode = #tpu.pipeline_mode<synchronous>, transform_indices = @transform_0, window_bounds = array<i64: 16, 128>}, {pipeline_mode = #tpu.pipeline_mode<synchronous>, transform_indices = @transform_1, window_bounds = array<i64: 1, 1>}]} {
    %c0 = arith.constant 0 : index
    %c0_0 = arith.constant 0 : index
    %0 = vector.load %arg1[%c0, %c0_0] : memref<16x128xf32, #tpu.memory_space<vmem>>, vector<16x128xf32>
    %1 = arith.mulf %0, %0 : vector<16x128xf32>
    %cst = arith.constant dense<0.000000e+00> : vector<16xf32>
    %2 = vector.multi_reduction <add>, %1, %cst [1] : vector<16x128xf32> to vector<16xf32>
    %3 = vector.shape_cast %2 : vector<16xf32> to vector<16x1xf32>
    %cst_1 = arith.constant 9.99999996E-13 : f32
    %4 = vector.broadcast %cst_1 : f32 to vector<16x1xf32>
    %5 = arith.addf %3, %4 : vector<16x1xf32>
    %6 = math.rsqrt %5 : vector<16x1xf32>
    %7 = vector.broadcast %6 : vector<16x1xf32> to vector<16x128xf32>
    %8 = arith.mulf %0, %7 : vector<16x128xf32>
    %9 = arith.truncf %8 : vector<16x128xf32> to vector<16x128xbf16>
    %10 = arith.extf %9 : vector<16x128xbf16> to vector<16x128xf32>
    %11 = arith.subf %8, %10 : vector<16x128xf32>
    %12 = arith.truncf %11 : vector<16x128xf32> to vector<16x128xbf16>
    %13 = tpu.iota {dimensions = array<i32: 0>} : vector<4x16xi32>
    %14 = tpu.iota {dimensions = array<i32: 1>} : vector<4x16xi32>
    %c4_i32 = arith.constant 4 : i32
    %c0_i32 = arith.constant 0 : i32
    %15 = arith.cmpi eq, %c4_i32, %c0_i32 : i32
    %c1_i32 = arith.constant 1 : i32
    %16 = arith.select %15, %c1_i32, %c4_i32 : i32
    %17 = vector.broadcast %16 : i32 to vector<4x16xi32>
    %18 = arith.remsi %14, %17 : vector<4x16xi32>
    %c0_i32_2 = arith.constant 0 : i32
    %19 = vector.broadcast %c0_i32_2 : i32 to vector<4x16xi32>
    %20 = arith.cmpi ne, %18, %19 : vector<4x16xi32>
    %c0_i32_3 = arith.constant 0 : i32
    %21 = vector.broadcast %c0_i32_3 : i32 to vector<4x16xi32>
    %22 = arith.cmpi slt, %18, %21 : vector<4x16xi32>
    %c0_i32_4 = arith.constant 0 : i32
    %23 = arith.cmpi slt, %16, %c0_i32_4 : i32
    %24 = vector.broadcast %23 : i1 to vector<4x16xi1>
    %25 = vector.broadcast %24 : vector<4x16xi1> to vector<4x16xi1>
    %26 = arith.xori %22, %25 : vector<4x16xi1>
    %27 = arith.andi %26, %20 : vector<4x16xi1>
    %28 = vector.broadcast %16 : i32 to vector<4x16xi32>
    %29 = arith.addi %18, %28 : vector<4x16xi32>
    %30 = arith.select %27, %29, %18 : vector<4x16xi1>, vector<4x16xi32>
    %31 = arith.cmpi eq, %30, %13 : vector<4x16xi32>
    %32 = arith.extui %31 : vector<4x16xi1> to vector<4x16xi32>
    %33 = arith.sitofp %32 : vector<4x16xi32> to vector<4x16xf32>
    %34 = arith.truncf %33 : vector<4x16xf32> to vector<4x16xbf16>
    %cst_5 = arith.constant dense<0.000000e+00> : vector<4x128xf32>
    %35 = tpu.matmul %34, %9, %cst_5 {dimension_numbers = #tpu.dot_dimension_numbers<[1], [0], [0], [1], [0, 0, 1, 1], [], []>} : vector<4x16xbf16>, vector<16x128xbf16>, vector<4x128xf32> -> vector<4x128xf32>
    %cst_6 = arith.constant dense<0.000000e+00> : vector<4x128xf32>
    %36 = tpu.matmul %34, %12, %cst_6 {dimension_numbers = #tpu.dot_dimension_numbers<[1], [0], [0], [1], [0, 0, 1, 1], [], []>} : vector<4x16xbf16>, vector<16x128xbf16>, vector<4x128xf32> -> vector<4x128xf32>
    %37 = arith.addf %35, %36 : vector<4x128xf32>
    %38 = arith.truncf %37 : vector<4x128xf32> to vector<4x128xbf16>
    %cst_7 = arith.constant dense<0.000000e+00> : vector<4x16xf32>
    %39 = tpu.matmul %38, %9, %cst_7 {dimension_numbers = #tpu.dot_dimension_numbers<[1], [1], [0], [0], [0, 0, 1, 0], [], []>} : vector<4x128xbf16>, vector<16x128xbf16>, vector<4x16xf32> -> vector<4x16xf32>
    %cst_8 = arith.constant 1.000000e+00 : bf16
    %40 = vector.broadcast %cst_8 : bf16 to vector<8x128xbf16>
    %41 = arith.mulf %9, %9 : vector<16x128xbf16>
    %cst_9 = arith.constant dense<0.000000e+00> : vector<8x16xf32>
    %42 = tpu.matmul %40, %41, %cst_9 {dimension_numbers = #tpu.dot_dimension_numbers<[1], [1], [0], [0], [0, 0, 1, 0], [], []>} : vector<8x128xbf16>, vector<16x128xbf16>, vector<8x16xf32> -> vector<8x16xf32>
    %43 = vector.extract_strided_slice %42 {offsets = [0, 0], sizes = [1, 16], strides = [1, 1]} : vector<8x16xf32> to vector<1x16xf32>
    %44 = tpu.iota {dimensions = array<i32: 0>} : vector<4x16xi32>
    %45 = tpu.iota {dimensions = array<i32: 1>} : vector<4x16xi32>
    %c4_i32_10 = arith.constant 4 : i32
    %c0_i32_11 = arith.constant 0 : i32
    %46 = arith.cmpi eq, %c4_i32_10, %c0_i32_11 : i32
    %c1_i32_12 = arith.constant 1 : i32
    %47 = arith.select %46, %c1_i32_12, %c4_i32_10 : i32
    %48 = vector.broadcast %47 : i32 to vector<4x16xi32>
    %49 = arith.remsi %45, %48 : vector<4x16xi32>
    %c0_i32_13 = arith.constant 0 : i32
    %50 = vector.broadcast %c0_i32_13 : i32 to vector<4x16xi32>
    %51 = arith.cmpi ne, %49, %50 : vector<4x16xi32>
    %c0_i32_14 = arith.constant 0 : i32
    %52 = vector.broadcast %c0_i32_14 : i32 to vector<4x16xi32>
    %53 = arith.cmpi slt, %49, %52 : vector<4x16xi32>
    %c0_i32_15 = arith.constant 0 : i32
    %54 = arith.cmpi slt, %47, %c0_i32_15 : i32
    %55 = vector.broadcast %54 : i1 to vector<4x16xi1>
    %56 = vector.broadcast %55 : vector<4x16xi1> to vector<4x16xi1>
    %57 = arith.xori %53, %56 : vector<4x16xi1>
    %58 = arith.andi %57, %51 : vector<4x16xi1>
    %59 = vector.broadcast %47 : i32 to vector<4x16xi32>
    %60 = arith.addi %49, %59 : vector<4x16xi32>
    %61 = arith.select %58, %60, %49 : vector<4x16xi1>, vector<4x16xi32>
    %62 = arith.cmpi eq, %61, %44 : vector<4x16xi32>
    %cst_16 = arith.constant 0.000000e+00 : f32
    %63 = vector.broadcast %cst_16 : f32 to vector<4x16xf32>
    %64 = arith.select %62, %39, %63 : vector<4x16xi1>, vector<4x16xf32>
    %cst_17 = arith.constant dense<0.000000e+00> : vector<16xf32>
    %65 = vector.multi_reduction <add>, %64, %cst_17 [0] : vector<4x16xf32> to vector<16xf32>
    %66 = vector.shape_cast %65 : vector<16xf32> to vector<1x16xf32>
    %67 = arith.subf %66, %43 : vector<1x16xf32>
    %cst_18 = arith.constant 1.66666663 : f32
    %68 = vector.broadcast %cst_18 : f32 to vector<1x16xf32>
    %69 = arith.mulf %67, %68 : vector<1x16xf32>
    %70 = math.exp %69 : vector<1x16xf32>
    %cst_19 = arith.constant 1.250000e+00 : f32
    %71 = vector.broadcast %cst_19 : f32 to vector<4x16xf32>
    %72 = arith.mulf %39, %71 : vector<4x16xf32>
    %73 = math.exp %72 : vector<4x16xf32>
    %cst_20 = arith.constant 0.000000e+00 : f32
    %74 = vector.broadcast %cst_20 : f32 to vector<4x16xf32>
    %75 = arith.select %62, %74, %73 : vector<4x16xi1>, vector<4x16xf32>
    %cst_21 = arith.constant dense<0.000000e+00> : vector<16xf32>
    %76 = vector.multi_reduction <add>, %75, %cst_21 [0] : vector<4x16xf32> to vector<16xf32>
    %77 = vector.shape_cast %76 : vector<16xf32> to vector<1x16xf32>
    %78 = arith.addf %70, %77 : vector<1x16xf32>
    %79 = math.log %78 : vector<1x16xf32>
    %80 = arith.subf %79, %69 : vector<1x16xf32>
    %cst_22 = arith.constant dense<0.000000e+00> : vector<1xf32>
    %81 = vector.multi_reduction <add>, %80, %cst_22 [1] : vector<1x16xf32> to vector<1xf32>
    %82 = vector.shape_cast %81 : vector<1xf32> to vector<1x1xf32>
    %cst_23 = arith.constant 6.250000e-03 : f32
    %83 = vector.broadcast %cst_23 : f32 to vector<1x1xf32>
    %84 = arith.mulf %82, %83 : vector<1x1xf32>
    %c0_24 = arith.constant 0 : index
    %c0_25 = arith.constant 0 : index
    %85 = vector.load %arg2[%c0_24, %c0_25] : memref<1x1xf32, #tpu.memory_space<vmem>>, vector<1x1xf32>
    tpu.vector_store %arg2[%c0_24, %c0_25], %84 {strides = array<i32>} : memref<1x1xf32, #tpu.memory_space<vmem>>, vector<1x1xf32>,
    return
  }
  func.func @transform_0(%arg0: i32) -> (i32, i32) {
    %c0_i32 = arith.constant 0 : i32
    %c0_i32_0 = arith.constant 0 : i32
    %c0_i32_1 = arith.constant 0 : i32
    return %c0_i32, %c0_i32_0 : i32, i32
  }
  func.func @transform_1(%arg0: i32) -> (i32, i32) {
    %c0_i32 = arith.constant 0 : i32
    %c0_i32_0 = arith.constant 0 : i32
    %c0_i32_1 = arith.constant 0 : i32
    return %c0_i32, %c0_i32_0 : i32, i32
  }
}

</mosaic_0001>

<bundles_post_ra>
// kernel: tpu_custom_call.1
= control target key start
LH: loop header
LB: loop body
LE: loop exit
PB: predicated region body
PF: predicated region fallthrough
CT: control target
= control target key end

     0   :  { %6 = vsyncpa [#allocation3], 0  ;;  %s307_s0 = inlined_call_operand.hbm [shape: f32[16,128], index: 0, kind: input, shape index: {}]   ;;  %s308_s1 = inlined_call_operand.hbm [shape: f32[1,1], index: 1, kind: output, shape index: {}]  }
   0x1   :  { %7 = vsyncpa [#allocation4], 0  ;;  %s12_s8 = sshll.u32 %s307_s0, 4  ;;  %s275_s9 = smov [#allocation2]   ;;  %s13_s8 = int_to_ptr.hbm [resolvable:$true] %s12_s8 }
   0x2   :  { %s14_s10 = sshll.u32 %s275_s9, 4  ;;  %s276_s11 = smov 128   ;;  %s15_s10 = int_to_ptr.vmem [resolvable:$true] %s14_s10 }
   0x3   :  { %s277_s12 = smov 8  }
   0x4   :  { %20 = dma.hbm_to_vmem [thread:$0]  %s13_s8, 256, %s15_s10, [#allocation3], %s276_s11, %s276_s11, %s277_s12  }
   0x5   :  { %271 = dma.done.wait [#allocation3], 256  }
   0x6   :  { %272 = vsyncadd [#allocation3], 4294967040  ;;  %v27_v0 = vld [vmem:[#allocation2] sm:$0xff]  ;;  %v28_v2 = vld [vmem:[#allocation2 + $0x8] sm:$0xff]  ;;  %v66_v16 = vlaneseq  ;;  %v278_v35 = vmov 0.0   ;;  %vm86_vm7 = vcmask 130048  }
   0x7   :  { %v29_v1 = vmul.f32 %v27_v0, %v27_v0  ;;  %v30_v3 = vmul.f32 %v28_v2, %v28_v2  ;;  %v279_v45 = vmov 1065369472   ;;  %vm153_vm8 = vcmask 125952   ;;  %s280_s0 = smov [#allocation5]   ;;  %s194_s16 = sshll.u32 %s308_s1, 4  ;;  %s195_s16 = int_to_ptr.hbm [resolvable:$true] %s194_s16 }
   0x8   :  { %v69_v21 = vand.u32 127, %v66_v16  ;;  %v67_v23 = vshrl.u32 %v66_v16, 7  ;;  %vm180_vm9 = vcmask 122880   ;;  %s192_s13 = sshll.u32 %s280_s0, 4  ;;  %vm185_vm10 = vcmask 0   ;;  %s193_s13 = int_to_ptr.vmem [resolvable:$true] %s192_s13 }
   0x9   :  { %31 = vadd.xlane.f32.xlu0 %v29_v1 }
   0xa   :  { %v74_v26 = vand.u32 3, %v69_v21 }
   0xc   :  { %vm294_vm6 = vcmp.eq.s32.totalorder %v74_v26, %v67_v23 }
   0xd   :  { %v204_v36 = vsel %vm294_vm6, 1.0, %v278_v35 }
   0xe   :  { %v85_v42 = vpack.c.bf16 %v204_v36, %v204_v36 }
  0x11   :  { %33 = vadd.xlane.f32.xlu0 %v30_v3 }
  0x7c   :  { %v32_v4 = vpop.xlane.xlu0 %31 }
  0x7d   :  { %v35_v5 = vadd.f32 1e-12, %v32_v4 }
  0x7f   :  { %213 = vrsqrt.f32 %v35_v5  ;;  %vm43_vm1 = vweird.f32 %v35_v5 }
  0x84   :  { %v34_v6 = vpop.xlane.xlu0 %33 }
  0x85   :  { %v214_v7 = vpop.eup %213  ;;  %v36_v8 = vadd.f32 1e-12, %v34_v6 }
  0x86   :  { %v38_v9 = vmul.f32 %v214_v7, %v35_v5  ;;  %vm44_vm0 = vweird.f32 %v214_v7 }
  0x87   :  { %215 = vrsqrt.f32 %v36_v8  ;;  %vm45_vm2 = vmor %vm43_vm1, %vm44_vm0  ;;  %vm53_vm4 = vweird.f32 %v36_v8 }
  0x88   :  { %v39_v10 = vmul.f32 %v214_v7, %v38_v9 }
  0x8a   :  { %v40_v11 = vmul.f32 0.5, %v39_v10 }
  0x8c   :  { %v41_v12 = vsub.f32 1.5, %v40_v11 }
  0x8d   :  { %v216_v13 = vpop.eup %215 }
  0x8e   :  { %v42_v14 = vmul.f32 %v214_v7, %v41_v12  ;;  %v48_v15 = vmul.f32 %v216_v13, %v36_v8  ;;  %vm54_vm3 = vweird.f32 %v216_v13 }
  0x8f   :  { %vm55_vm5 = vmor %vm53_vm4, %vm54_vm3 }
  0x90   :  { %v46_v17 = vsel %vm45_vm2, %v214_v7, %v42_v14  ;;  %v49_v18 = vmul.f32 %v216_v13, %v48_v15 }
  0x91   :  { %v57_v20 = vmul.f32 %v46_v17, %v27_v0 }
  0x92   :  { %v50_v19 = vmul.f32 0.5, %v49_v18 }
  0x93   :  { %v59_v25 = vpack.c.bf16 %v57_v20, %v57_v20 }
  0x94   :  { %v51_v22 = vsub.f32 1.5, %v50_v19 }
  0x95   :  { %v61_v29 = vunpack.c.l.bf16 %v59_v25  ;;  %v105_v32 = vunpack.c.l.b16 %v59_v25 }
  0x96   :  { %v52_v24 = vmul.f32 %v216_v13, %v51_v22 }
  0x97   :  { %v63_v37 = vsub.f32 %v57_v20, %v61_v29  ;;  %v136_v40 = vmul.f32 %v61_v29, %v61_v29 }
  0x98   :  { %v56_v27 = vsel %vm55_vm5, %v216_v13, %v52_v24 }
  0x99   :  { %v58_v28 = vmul.f32 %v56_v27, %v28_v2 }
  0x9b   :  { %v60_v31 = vpack.c.bf16 %v58_v28, %v58_v28 }
  0x9d   :  { %v106_v33 = vunpack.c.l.b16 %v60_v31  ;;  %v62_v34 = vunpack.c.l.bf16 %v60_v31 }
  0x9f   :  { %v107_v38 = vpack.c.b16 %v106_v33, %v105_v32  ;;  %v64_v39 = vsub.f32 %v58_v28, %v62_v34  ;;  %v137_v41 = vmul.f32 %v62_v34, %v62_v34 }
  0xa1   :  { %116 = vmatpush.bf16.msra.mxu1 %v107_v38  ;;  %130 = vmatpush.bf16.xpose.msra.mxu2 %v107_v38  ;;  %v65_v43 = vpack.c.bf16 %v64_v39, %v63_v37  ;;  %v138_v44 = vpack.c.bf16 %v137_v41, %v136_v40 }
  0xa3   :  { %97 = vmatpush.bf16.msra.mxu0 %v65_v43  ;;  %146 = vmatpush.bf16.xpose.msra.mxu3 %v138_v44 }
  0xa4   :  { %206 = vmatmul.msk.bf16.vlgmr.msra.gmra.mxu1 %vm86_vm7, %v85_v42 }
  0xa6   :  { %205 = vmatmul.msk.bf16.vlgmr.msra.gmra.mxu0 %vm86_vm7, %v85_v42 }
  0xaa   :  { %147 = vmatmul.bf16.vlgmr.msra.gmra.mxu3 %v279_v45 }
 0x121   :  { %v118_v46 = vpop.f32.mrf.mxu1 }
 0x123   :  { %v99_v47 = vpop.f32.mrf.mxu0 }
 0x124   :  { %v119_v48 = vadd.f32 %v118_v46, %v99_v47 }
 0x126   :  { %v122_v49 = vpack.c.bf16 %v119_v48, %v119_v48 }
 0x128   :  { %131 = vmatmul.bf16.vlgmr.msra.gmra.mxu2 %v122_v49 }
 0x129   :  { %v120_v50 = vpop.f32.mrf.mxu1 }
 0x12b   :  { %v101_v51 = vpop.f32.mrf.mxu0 }
 0x12d   :  { %v148_v52 = vpop.f32.mrf.mxu3 }
 0x135   :  { %v150_v53 = vpop.f32.mrf.mxu3 }
 0x1ab   :  { %v132_v54 = vpop.f32.mrf.mxu2 }
 0x1ac   :  { %v152_v55 = vsel %vm294_vm6, %v132_v54, 0.0  ;;  %v165_v56 = vmul.f32 1.25, %v132_v54 }
 0x1ad   :  { %v154_v57 = vsel %vm153_vm8, %v152_v55, 0.0 }
 0x1ae   :  { %v155_v58 = vrot.slane %v154_v57, 4  ;;  %v166_v59 = vmul.f32 1.442695, %v165_v56 }
 0x1b0   :  { %v156_v60 = vadd.f32 %v155_v58, %v154_v57  ;;  %217 = vpow2.f32 %v166_v59 }
 0x1b2   :  { %v157_v61 = vrot.slane %v156_v60, 2 }
 0x1b3   :  { %v134_v62 = vpop.f32.mrf.mxu2 }
 0x1b4   :  { %v158_v63 = vadd.f32 %v157_v61, %v156_v60 }
 0x1b6   :  { %v218_v0 = vpop.eup %217  ;;  %v159_v1 = vrot.slane %v158_v63, 1 }
 0x1b7   :  { %v168_v2 = vsel %vm294_vm6, 0.0, %v218_v0 }
 0x1b8   :  { %v169_v3 = vsel %vm153_vm8, %v168_v2, 0.0  ;;  %v160_v4 = vadd.f32 %v159_v1, %v158_v63 }
 0x1b9   :  { %v170_v5 = vrot.slane %v169_v3, 4 }
 0x1ba   :  { %v161_v6 = vsub.f32 %v160_v4, %v148_v52 }
 0x1bb   :  { %v171_v7 = vadd.f32 %v170_v5, %v169_v3 }
 0x1bc   :  { %v162_v8 = vmul.f32 1.6666666, %v161_v6 }
 0x1bd   :  { %v172_v9 = vrot.slane %v171_v7, 2 }
 0x1be   :  { %v163_v10 = vmul.f32 1.442695, %v162_v8 }
 0x1bf   :  { %v173_v11 = vadd.f32 %v172_v9, %v171_v7 }
 0x1c0   :  { %219 = vpow2.f32 %v163_v10 }
 0x1c1   :  { %v174_v12 = vrot.slane %v173_v11, 1 }
 0x1c3   :  { %v175_v13 = vadd.f32 %v174_v12, %v173_v11 }
 0x1c6   :  { %v220_v14 = vpop.eup %219 }
 0x1c7   :  { %v176_v15 = vadd.f32 %v220_v14, %v175_v13 }
 0x1c9   :  { %221 = vlog2.f32 %v176_v15 }
 0x1cf   :  { %v222_v16 = vpop.eup %221 }
 0x1d0   :  { %v178_v17 = vmul.f32 0.6931472, %v222_v16 }
 0x1d2   :  { %v179_v18 = vsub.f32 %v178_v17, %v162_v8 }
 0x1d4   :  { %v181_v19 = vsel %vm180_vm9, %v179_v18, 0.0 }
 0x1d5   :  { %182 = vadd.xlane.f32.xlu1 %v181_v19 }
 0x248   :  { %v183_v20 = vpop.xlane.xlu1 %182 }
 0x249   :  { %v184_v21 = vmul.f32 0.00625, %v183_v20 }
 0x24b   :  { %186 = vst.msk [vmem:[#allocation5] sm:$0x1] %vm185_vm10, %v184_v21 }
 0x24c   :  { %197 = dma.vmem_to_hbm [thread:$0]  %s193_s13, 16, %s195_s16, [#allocation4]  }
 0x24d   :  { %273 = dma.done.wait [#allocation4], 16  }
 0x24e   :  { %274 = vsyncadd [#allocation4], 4294967280 }
 0x24f   :  { %202 = vsyncpa [#allocation3], 1 }
 0x250   :  { %203 = vsyncpa [#allocation4], 1 }

</bundles_post_ra>
